<compile_context>
chip_gen: v7x
topology: tpu7x:2x2x1
jax: 0.10.0
libtpu: 0.0.40
codegen_flags: <defaults>
</compile_context>

<pallas_src>
import functools

import jax
import jax.numpy as jnp
from jax.experimental import pallas as pl
from jax.experimental.pallas import tpu as pltpu

SOFTPLUS_THRESHOLD = 5.0  # nn.Softplus(beta=1, threshold=5)


def linreg_softplus_kernel(x_ref, w_ref, b_ref, o_ref, acc_ref):
    k = pl.program_id(2)

    @pl.when(k == 0)
    def _():
        acc_ref[...] = jnp.zeros_like(acc_ref)

    # MXU matmul, f32 accumulation regardless of operand dtype.
    acc_ref[...] += jnp.dot(
        x_ref[...], w_ref[...], preferred_element_type=jnp.float32
    )

    @pl.when(k == pl.num_programs(2) - 1)
    def _():
        h = acc_ref[...] + b_ref[...].astype(jnp.float32)  # (1, tn) broadcasts
        # Softplus(beta=1, threshold=5): x if x > 5 else log1p(exp(x)).
        # Clamp the exp input so the dead branch does no extra EUP work / inf.
        sp = jnp.log1p(jnp.exp(jnp.minimum(h, SOFTPLUS_THRESHOLD)))
        o_ref[...] = jnp.where(h > SOFTPLUS_THRESHOLD, h, sp).astype(o_ref.dtype)


def _round_up(x, m):
    return ((x + m - 1) // m) * m


@functools.partial(jax.jit, static_argnames=("compute_dtype",))
def linear_regression_forward(x, w_t, b, *, compute_dtype=jnp.float32):
    """x: (B, P) f32, w_t: (P, M) f32, b: (1, M) f32 -> (B, M) f32.

    compute_dtype=jnp.bfloat16 halves operand HBM traffic and matches the
    bf16 MXU on v6e/v7x (accumulation stays f32 inside the kernel).
    """
    B, P = x.shape
    P2, M = w_t.shape
    assert P == P2 and b.shape == (1, M)

    # Tile sizes: lane-dense (trailing dims multiples of 128), second-minor
    # multiples of 8, capped so 2 inputs x 2 pipeline buffers + f32 acc fit
    # well within v7x's 64 MiB VMEM (also good on v5e/v6e).
    tm = min(_round_up(B, 8), 256)
    tn = min(_round_up(M, 128), 256)
    tk = min(_round_up(P, 128), 512)

    Bp, Mp, Pp = _round_up(B, tm), _round_up(M, tn), _round_up(P, tk)

    xp = x if (Bp == B and Pp == P) else jnp.pad(x, ((0, Bp - B), (0, Pp - P)))
    wp = w_t if (Pp == P and Mp == M) else jnp.pad(w_t, ((0, Pp - P), (0, Mp - M)))
    bp = b if Mp == M else jnp.pad(b, ((0, 0), (0, Mp - M)))

    xp = xp.astype(compute_dtype)
    wp = wp.astype(compute_dtype)

    grid = (Bp // tm, Mp // tn, Pp // tk)

    out = pl.pallas_call(
        linreg_softplus_kernel,
        out_shape=jax.ShapeDtypeStruct((Bp, Mp), jnp.float32),
        grid=grid,
        in_specs=[
            pl.BlockSpec((tm, tk), lambda i, j, k: (i, k)),
            pl.BlockSpec((tk, tn), lambda i, j, k: (k, j)),
            pl.BlockSpec((1, tn), lambda i, j, k: (0, j)),
        ],
        out_specs=pl.BlockSpec((tm, tn), lambda i, j, k: (i, j)),
        scratch_shapes=[pltpu.VMEM((tm, tn), jnp.float32)],
        compiler_params=pltpu.CompilerParams(
            dimension_semantics=("parallel", "parallel", "arbitrary"),
        ),
    )(xp, wp, bp)

    return out[:B, :M]


if __name__ == "__main__":
    # Small shapes consistent with LinearRegression(p, m): p=32 features, m=16 outputs.
    B, P, M = 8, 32, 16

    key = jax.random.PRNGKey(0)
    kx, kw, kb = jax.random.split(key, 3)

    # nn.Linear default init: U(-1/sqrt(p), 1/sqrt(p)). PyTorch weight is (M, P);
    # we store it transposed (P, M) for the kernel.
    bound = 1.0 / (P ** 0.5)
    w = jax.random.uniform(kw, (M, P), jnp.float32, minval=-bound, maxval=bound)
    b = jax.random.uniform(kb, (M,), jnp.float32, minval=-bound, maxval=bound)
    x = jax.random.normal(kx, (B, P), jnp.float32)

    w_t = jnp.transpose(w)   # (P, M)
    b2d = b.reshape(1, M)    # (1, M)

    out = linear_regression_forward(x, w_t, b2d)
    out = jax.block_until_ready(out)

    # Pure-JAX reference.
    h_ref = x @ w_t + b2d
    ref = jnp.where(h_ref > SOFTPLUS_THRESHOLD, h_ref, jnp.log1p(jnp.exp(h_ref)))
    assert out.shape == (B, M)
    assert jnp.allclose(out, ref, atol=1e-5, rtol=1e-5)

    print("KERNEL_OK")
</pallas_src>

<mosaic_0001>
module attributes {stable_mosaic.version = 11 : i64} {
  func.func @linreg_softplus_kernel(%arg0: i32, %arg1: i32, %arg2: i32, %arg3: memref<8x128xf32, #tpu.memory_space<vmem>>, %arg4: memref<128x128xf32, #tpu.memory_space<vmem>>, %arg5: memref<1x128xf32, #tpu.memory_space<vmem>>, %arg6: memref<8x128xf32, #tpu.memory_space<vmem>>, %arg7: memref<8x128xf32, #tpu.memory_space<vmem>>) attributes {dimension_semantics = [#tpu.dimension_semantics<parallel>, #tpu.dimension_semantics<parallel>, #tpu.dimension_semantics<arbitrary>], iteration_bounds = array<i64: 1, 1, 1>, scalar_prefetch = 0 : i64, scratch_operands = 1 : i64, tpu.core_type = #tpu.core_type<tc>, window_params = [{transform_indices = @transform_0, window_bounds = array<i64: 8, 128>}, {transform_indices = @transform_1, window_bounds = array<i64: 128, 128>}, {transform_indices = @transform_2, window_bounds = array<i64: 1, 128>}, {transform_indices = @transform_3, window_bounds = array<i64: 8, 128>}]} {
    %c0_i32 = arith.constant 0 : i32
    %0 = arith.cmpi eq, %arg2, %c0_i32 : i32
    %1 = arith.extui %0 : i1 to i32
    %c0_i32_0 = arith.constant 0 : i32
    %2 = arith.cmpi ne, %1, %c0_i32_0 : i32
    scf.if %2 {
      %cst_10 = arith.constant 0.000000e+00 : f32
      %12 = vector.broadcast %cst_10 : f32 to vector<8x128xf32>
      %c0_11 = arith.constant 0 : index
      %c0_12 = arith.constant 0 : index
      %13 = vector.load %arg7[%c0_11, %c0_12] : memref<8x128xf32, #tpu.memory_space<vmem>>, vector<8x128xf32>
      tpu.vector_store %arg7[%c0_11, %c0_12], %12 {strides = array<i32>} : memref<8x128xf32, #tpu.memory_space<vmem>>, vector<8x128xf32>,
    } else {
    }
    %c0 = arith.constant 0 : index
    %c0_1 = arith.constant 0 : index
    %3 = vector.load %arg7[%c0, %c0_1] : memref<8x128xf32, #tpu.memory_space<vmem>>, vector<8x128xf32>
    %c0_2 = arith.constant 0 : index
    %c0_3 = arith.constant 0 : index
    %4 = vector.load %arg3[%c0_2, %c0_3] : memref<8x128xf32, #tpu.memory_space<vmem>>, vector<8x128xf32>
    %c0_4 = arith.constant 0 : index
    %c0_5 = arith.constant 0 : index
    %5 = vector.load %arg4[%c0_4, %c0_5] : memref<128x128xf32, #tpu.memory_space<vmem>>, vector<128x128xf32>
    %cst = arith.constant dense<0.000000e+00> : vector<8x128xf32>
    %6 = tpu.matmul %4, %5, %cst {dimension_numbers = #tpu.dot_dimension_numbers<[1], [0], [0], [1], [0, 0, 1, 1], [], []>} : vector<8x128xf32>, vector<128x128xf32>, vector<8x128xf32> -> vector<8x128xf32>
    %7 = arith.addf %3, %6 : vector<8x128xf32>
    %c0_6 = arith.constant 0 : index
    %c0_7 = arith.constant 0 : index
    %8 = vector.load %arg7[%c0_6, %c0_7] : memref<8x128xf32, #tpu.memory_space<vmem>>, vector<8x128xf32>
    tpu.vector_store %arg7[%c0_6, %c0_7], %7 {strides = array<i32>} : memref<8x128xf32, #tpu.memory_space<vmem>>, vector<8x128xf32>,
    %c0_i32_8 = arith.constant 0 : i32
    %9 = arith.cmpi eq, %arg2, %c0_i32_8 : i32
    %10 = arith.extui %9 : i1 to i32
    %c0_i32_9 = arith.constant 0 : i32
    %11 = arith.cmpi ne, %10, %c0_i32_9 : i32
    scf.if %11 {
      %c0_10 = arith.constant 0 : index
      %c0_11 = arith.constant 0 : index
      %12 = vector.load %arg7[%c0_10, %c0_11] : memref<8x128xf32, #tpu.memory_space<vmem>>, vector<8x128xf32>
      %c0_12 = arith.constant 0 : index
      %c0_13 = arith.constant 0 : index
      %13 = vector.load %arg5[%c0_12, %c0_13] : memref<1x128xf32, #tpu.memory_space<vmem>>, vector<1x128xf32>
      %14 = vector.broadcast %13 : vector<1x128xf32> to vector<8x128xf32>
      %15 = arith.addf %12, %14 : vector<8x128xf32>
      %cst_14 = arith.constant 5.000000e+00 : f32
      %16 = vector.broadcast %cst_14 : f32 to vector<8x128xf32>
      %17 = arith.minimumf %15, %16 : vector<8x128xf32>
      %18 = math.exp %17 : vector<8x128xf32>
      %19 = math.log1p %18 : vector<8x128xf32>
      %cst_15 = arith.constant 5.000000e+00 : f32
      %20 = vector.broadcast %cst_15 : f32 to vector<8x128xf32>
      %21 = arith.cmpf ogt, %15, %20 : vector<8x128xf32>
      %22 = arith.select %21, %15, %19 : vector<8x128xi1>, vector<8x128xf32>
      %c0_16 = arith.constant 0 : index
      %c0_17 = arith.constant 0 : index
      %23 = vector.load %arg6[%c0_16, %c0_17] : memref<8x128xf32, #tpu.memory_space<vmem>>, vector<8x128xf32>
      tpu.vector_store %arg6[%c0_16, %c0_17], %22 {strides = array<i32>} : memref<8x128xf32, #tpu.memory_space<vmem>>, vector<8x128xf32>,
    } else {
    }
    return
  }
  func.func @transform_0(%arg0: i32, %arg1: i32, %arg2: i32) -> (i32, i32) {
    %c0_i32 = arith.constant 0 : i32
    return %arg0, %arg2 : i32, i32
  }
  func.func @transform_1(%arg0: i32, %arg1: i32, %arg2: i32) -> (i32, i32) {
    %c0_i32 = arith.constant 0 : i32
    return %arg2, %arg1 : i32, i32
  }
  func.func @transform_2(%arg0: i32, %arg1: i32, %arg2: i32) -> (i32, i32) {
    %c0_i32 = arith.constant 0 : i32
    %c0_i32_0 = arith.constant 0 : i32
    return %c0_i32, %arg1 : i32, i32
  }
  func.func @transform_3(%arg0: i32, %arg1: i32, %arg2: i32) -> (i32, i32) {
    %c0_i32 = arith.constant 0 : i32
    return %arg0, %arg1 : i32, i32
  }
}

</mosaic_0001>

<bundles_post_ra>
// kernel: linear_regression_forward.1
= control target key start
LH: loop header
LB: loop body
LE: loop exit
PB: predicated region body
PF: predicated region fallthrough
CT: control target
= control target key end

     0   :  { %v260_v3 = vmov 0.0|0.0   ;;  %vm261_vm0 = vmmov 0   ;;  %v262_v6 = vmov 0.0   ;;  %s350_s0 = inlined_call_operand.vmem [shape: f32[8,128], index: 0, kind: input, shape index: {}]   ;;  %s351_s1 = inlined_call_operand.vmem [shape: f32[128,128], index: 1, kind: input, shape index: {}]   ;;  %s352_s2 = inlined_call_operand.vmem [shape: f32[1,128], index: 2, kind: input, shape index: {}]   ;;  %s353_s3 = inlined_call_operand.hbm [shape: f32[8,128], index: 3, kind: output, shape index: {}]  }
   0x1   :  { %v22_v0 = vld [vmem:[%s351_s1] sm:$0xff]  ;;  %v23_v1 = vld [vmem:[%s351_s1 + $0x8] sm:$0xff]  ;;  %v24_v2 = vld [vmem:[%s351_s1 + $0x10] sm:$0xff]  ;;  %204 = vmatprep.subr.bf16.mxu0 %v260_v3  ;;  %201 = vmatprep.mubr.msk.f32.mxu0 %vm261_vm0, %v262_v6 }
   0x2   :  { %v205_v4 = vpack.c.bf16 %v23_v1, %v22_v0  ;;  %v25_v5 = vld [vmem:[%s351_s1 + $0x18] sm:$0xff]  ;;  %v26_v8 = vld [vmem:[%s351_s1 + $0x20] sm:$0xff]  ;;  %v27_v9 = vld [vmem:[%s351_s1 + $0x28] sm:$0xff] }
   0x3   :  { %v208_v7 = vpack.c.bf16 %v25_v5, %v24_v2 }
   0x4   :  { %206 = vmatpush3.bf16.msra.mxu0 %v205_v4 }
   0x5   :  { %207 = vmatprep.subr.bf16.mxu0 %v260_v3 }
   0x6   :  { %8 = vsyncpa [#allocation4], 0  ;;  %v211_v10 = vpack.c.bf16 %v27_v9, %v26_v8  ;;  %v28_v11 = vld [vmem:[%s351_s1 + $0x30] sm:$0xff]  ;;  %v29_v12 = vld [vmem:[%s351_s1 + $0x38] sm:$0xff] }
   0x7   :  { %v214_v13 = vpack.c.bf16 %v29_v12, %v28_v11  ;;  %v30_v14 = vld [vmem:[%s351_s1 + $0x40] sm:$0xff]  ;;  %v31_v15 = vld [vmem:[%s351_s1 + $0x48] sm:$0xff]  ;;  %v32_v17 = vld [vmem:[%s351_s1 + $0x50] sm:$0xff] }
   0x8   :  { %209 = vmatpush3.bf16.msra.mxu0 %v208_v7  ;;  %v217_v16 = vpack.c.bf16 %v31_v15, %v30_v14  ;;  %v33_v18 = vld [vmem:[%s351_s1 + $0x58] sm:$0xff]  ;;  %v34_v20 = vld [vmem:[%s351_s1 + $0x60] sm:$0xff]  ;;  %v35_v21 = vld [vmem:[%s351_s1 + $0x68] sm:$0xff] }
   0x9   :  { %210 = vmatprep.subr.bf16.mxu0 %v260_v3  ;;  %v220_v19 = vpack.c.bf16 %v33_v18, %v32_v17  ;;  %v223_v22 = vpack.c.bf16 %v35_v21, %v34_v20  ;;  %v36_v23 = vld [vmem:[%s351_s1 + $0x70] sm:$0xff]  ;;  %v37_v24 = vld [vmem:[%s351_s1 + $0x78] sm:$0xff]  ;;  %v21_v26 = vld [vmem:[%s350_s0] sm:$0xff]  ;;  %s263_s1 = smov [#allocation3]  }
   0xa   :  { %v226_v25 = vpack.c.bf16 %v37_v24, %v36_v23  ;;  %v151_v27 = vld [vmem:[%s352_s2] ss:$0 sm:$0xff]  ;;  %s143_s0 = sshll.u32 %s263_s1, 4  ;;  %s144_s0 = int_to_ptr.vmem [resolvable:$true] %s143_s0 }
   0xb   :  { %s236_s2 = scalar_lea.vmem %s144_s0, 128  ;;  %p241_p1 = scmp.lt.s32.totalorder %s144_s0, %s144_s0 }
   0xc   :  { %212 = vmatpush3.bf16.msra.mxu0 %v211_v10  ;;  %p237_p0 = scmp.ne.s32.totalorder %s144_s0, %s236_s2  ;;  %p242_p2 = scmp.lt.s32.totalorder %s236_s2, %s236_s2 }
   0xd   :  { %213 = vmatprep.subr.bf16.mxu0 %v260_v3 }
   0xe   :  { %p243_p3 = por %p242_p2, %p241_p1 }
  0x10   :  { %215 = vmatpush3.bf16.msra.mxu0 %v214_v13  ;;  %p244_p4 = pnand %p243_p3, %p237_p0 }
  0x11   :  { %216 = vmatprep.subr.bf16.mxu0 %v260_v3 }
  0x14   :  { %218 = vmatpush3.bf16.msra.mxu0 %v217_v16 }
  0x15   :  { %219 = vmatprep.subr.bf16.mxu0 %v260_v3 }
  0x18   :  { %221 = vmatpush3.bf16.msra.mxu0 %v220_v19 }
  0x19   :  { %222 = vmatprep.subr.bf16.mxu0 %v260_v3 }
  0x1c   :  { %224 = vmatpush3.bf16.msra.mxu0 %v223_v22 }
  0x1d   :  { %225 = vmatprep.subr.bf16.mxu0 %v260_v3 }
  0x20   :  { %227 = vmatpush3.bf16.msra.mxu0 %v226_v25 }
  0x23   :  { %202 = vmatmul.mubr.f32.vlgmr.msra.gmra.mrb[0].mxu0 %v21_v26 }
  0xf6   :  { %v104_v28 = vpop.f32.mrb[0].mxu0 }
  0xf7   :  { %v121_v29 = vadd.f32 %v151_v27, %v104_v28  ;;  %v203_v30 = vpop.f32.mrb[1].mxu0 }
  0xf9   :  { %v122_v31 = vmin.f32 %v121_v29, 5.0  ;;  %vm134_vm2 = vcmp.gt.f32.partialorder %v121_v29, 5.0 }
  0xfb   :  { %v123_v32 = vmul.f32 1.442695, %v122_v31 }
  0xfd   :  { %232 = vpow2.f32 %v123_v32 }
 0x107   :  { %v233_v33 = vpop.eup %232 }
 0x108   :  { %v125_v34 = vadd.f32 1.0, %v233_v33  ;;  %v128_v35 = vmul.f32 -0.5, %v233_v33  ;;  %v131_v37 = vand.u32 2147483647, %v233_v33 }
 0x10a   :  { %234 = vlog2.f32 %v125_v34  ;;  %v129_v36 = vadd.f32 1.0, %v128_v35  ;;  %vm132_vm1 = vcmp.lt.f32.partialorder %v131_v37, 0.0004427343 }
 0x10c   :  { %v130_v40 = vmul.f32 %v233_v33, %v129_v36 }
 0x114   :  { %v235_v38 = vpop.eup %234 }
 0x115   :  { %v127_v39 = vmul.f32 0.6931472, %v235_v38 }
 0x117   :  { %v133_v41 = vsel %vm132_vm1, %v130_v40, %v127_v39 }
 0x118   :  { %v135_v42 = vsel %vm134_vm2, %v121_v29, %v133_v41 }
 0x119   :  { %136 = vst [vmem:[#allocation3] sm:$0xff] %v135_v42 }
 0x11a   :  { %247 = shalt.err (!%p244_p4)
}
 0x11b   :  { %s248_s23 = scalar_lea.hbm %s353_s3, 128 }
 0x11c   :  { %p249_p5 = scmp.ne.s32.totalorder %s353_s3, %s248_s23  ;;  %p252_p6 = scmp.lt.u32.totalorder %s248_s23, %s353_s3 }
 0x11e   :  { %p254_p7 = pnand %p252_p6, %p249_p5 }
 0x120   :  { %257 = shalt.err (!%p254_p7)
}
 0x121   :  { %146 = dma.vmem_to_hbm [thread:$0]  %s144_s0, 128, %s353_s3, [#allocation4]  }
 0x122   :  { %258 = dma.done.wait [#allocation4], 128  }
 0x123   :  { %259 = vsyncadd [#allocation4], 4294967168 }
 0x124   :  { %150 = vsyncpa [#allocation4], 1 }

</bundles_post_ra>
